<compile_context>
chip_gen: v5e
topology: v5e:2x2
jax: 0.10.0
libtpu: 0.0.40
codegen_flags: <defaults>
</compile_context>

<pallas_src>
import functools

import jax
import jax.numpy as jnp
from jax.experimental import pallas as pl
from jax.experimental.pallas import tpu as pltpu


def _rnn_kernel(num_layers, flip_batch,
                x_ref,      # (B, S, I)  float32, batch-first (un-flipped)
                w_ih0_ref,  # (I, H)     layer-0 input weight (pre-transposed)
                w_ihl_ref,  # (max(L-1,1), H, H) input weights, layers 1..L-1
                w_hh_ref,   # (L, H, H)  hidden weights (pre-transposed)
                b_ref,      # (L, 1, H)  b_ih + b_hh per layer
                fc_w_ref,   # (H, O)
                fc_b_ref,   # (1, O)
                out_ref):   # (B, S, O)  batch-first
    B, S, _ = x_ref.shape
    H = w_hh_ref.shape[-1]

    # Batch-major flat activations (row = b * S + t), already in OUTPUT batch
    # order: the torch batch flip is a pure permutation folded into this read.
    def src(b):
        return (B - 1 - b) if flip_batch else b

    cur = jnp.concatenate([x_ref[src(b)] for b in range(B)], axis=0)  # (B*S, I)
    batch_major = True

    for l in range(num_layers):
        w_ih = w_ih0_ref[...] if l == 0 else w_ihl_ref[l - 1]
        w_hh = w_hh_ref[l]
        bias = b_ref[l]                                               # (1, H)

        # One GEMM per layer, off the recurrence critical path: input
        # projection + fused bias for every (batch, time) row.
        proj = jnp.dot(cur, w_ih,
                       preferred_element_type=jnp.float32) + bias     # (*, H)

        # Batched relu recurrence: one (B, H) x (H, H) matmul per timestep.
        # Only h @ W_hh is serial; the B batch rows ride the same MXU op.
        h = jnp.zeros((B, H), jnp.float32)
        outs = []
        for t in range(S):
            if batch_major:
                # Layer 0 input is batch-major -> gather B rows for step t.
                xt = jnp.concatenate(
                    [proj[b * S + t:b * S + t + 1, :] for b in range(B)],
                    axis=0)                                            # (B, H)
            else:
                # Deeper layers are time-major -> contiguous slice.
                xt = proj[t * B:(t + 1) * B, :]                        # (B, H)
            h = jnp.maximum(
                xt + jnp.dot(h, w_hh, preferred_element_type=jnp.float32),
                0.0)
            outs.append(h)

        # Next layer consumes time-major rows (row = t * B + b).
        cur = jnp.concatenate(outs, axis=0)                            # (S*B, H)
        batch_major = False

    # Re-pack to batch-major so the FC result can be written with B coalesced
    # (S, O) stores instead of per-timestep masked stores.
    cur = jnp.concatenate(
        [jnp.concatenate([cur[t * B + b:t * B + b + 1, :] for t in range(S)],
                         axis=0)
         for b in range(B)], axis=0)                                    # (B*S, H)

    # FC head: a single GEMM over all rows, then one bias broadcast add.
    out_flat = (jnp.dot(cur, fc_w_ref[...],
                        preferred_element_type=jnp.float32)
                + fc_b_ref[...])                                        # (B*S, O)

    for b in range(B):
        out_ref[b] = out_flat[b * S:(b + 1) * S, :]


def init_params(key, input_size, hidden_size, output_size, num_layers):
    """Deterministic init mirroring torch's U(-1/sqrt(H), 1/sqrt(H))."""
    scale = 1.0 / jnp.sqrt(jnp.float32(hidden_size))
    n_keys = 4 * num_layers + 2
    ks = list(jax.random.split(key, n_keys))

    def u(k, shape):
        return jax.random.uniform(k, shape, jnp.float32, -scale, scale)

    w_ih0 = u(ks.pop(), (input_size, hidden_size))           # transposed
    w_ihl = []
    w_hh = []
    b = []
    for l in range(num_layers):
        if l > 0:
            w_ihl.append(u(ks.pop(), (hidden_size, hidden_size)))
        w_hh.append(u(ks.pop(), (hidden_size, hidden_size)))
        b_ih = u(ks.pop(), (hidden_size,))
        b_hh = u(ks.pop(), (hidden_size,))
        b.append((b_ih + b_hh).reshape(1, hidden_size))
    if not w_ihl:  # keep a non-empty dummy so the kernel signature is static
        w_ihl.append(jnp.zeros((hidden_size, hidden_size), jnp.float32))

    fc_w = u(ks.pop(), (hidden_size, output_size))            # transposed
    fc_b = u(ks.pop(), (output_size,)).reshape(1, output_size)

    return dict(
        w_ih0=w_ih0,
        w_ihl=jnp.stack(w_ihl, axis=0),
        w_hh=jnp.stack(w_hh, axis=0),
        b=jnp.stack(b, axis=0),
        fc_w=fc_w,
        fc_b=fc_b,
    )


def rnn_forward(y, params, num_layers):
    """Mirrors RNN.forward: flip along dim 0, optional unsqueeze, RNN, Linear."""
    if y.ndim == 2:
        # torch: y[0,:] is 1-D -> flip is along the sequence, then unsqueeze(0).
        y = jnp.flip(y, axis=0)[None, :, :]
        flip_batch = False
    else:
        # 3-D batch-first input: the dim-0 flip is a batch permutation, folded
        # into the kernel's input reads (no wrapper flip / HBM round trip).
        flip_batch = True

    B, S, _ = y.shape
    O = params["fc_w"].shape[-1]

    # Explicit VMEM budget: everything is whole-array resident; generous
    # headroom but well under the scoped default on all generations.
    resident_bytes = 4 * (y.size + B * S * O
                          + sum(int(v.size) for v in params.values()))
    vmem_limit = int(min(32 * 1024 * 1024,
                         max(8 * 1024 * 1024, 8 * resident_bytes)))

    kernel = functools.partial(_rnn_kernel, num_layers, flip_batch)
    out = pl.pallas_call(
        kernel,
        out_shape=jax.ShapeDtypeStruct((B, S, O), jnp.float32),
        in_specs=[pl.BlockSpec(memory_space=pltpu.MemorySpace.VMEM)] * 7,
        out_specs=pl.BlockSpec(memory_space=pltpu.MemorySpace.VMEM),
        compiler_params=pltpu.CompilerParams(vmem_limit_bytes=vmem_limit),
    )(y, params["w_ih0"], params["w_ihl"], params["w_hh"], params["b"],
      params["fc_w"], params["fc_b"])
    return out


def rnn_reference(y, params, num_layers):
    """Pure-JAX reference of the same forward pass (for a sanity check)."""
    hp = jax.lax.Precision.HIGHEST
    y = jnp.flip(y, axis=0)
    if y.ndim == 2:
        y = y[None, :, :]
    B, S, _ = y.shape
    H = params["w_hh"].shape[-1]
    x = y
    for l in range(num_layers):
        w_ih = params["w_ih0"] if l == 0 else params["w_ihl"][l - 1]
        w_hh = params["w_hh"][l]
        b = params["b"][l]
        h = jnp.zeros((B, H), jnp.float32)
        outs = []
        for t in range(S):
            h = jax.nn.relu(jnp.dot(x[:, t, :], w_ih, precision=hp)
                            + jnp.dot(h, w_hh, precision=hp) + b)
            outs.append(h)
        x = jnp.stack(outs, axis=1)
    return jnp.dot(x, params["fc_w"], precision=hp) + params["fc_b"]


if __name__ == "__main__":
    # config: input_size=4, hidden_size=32, output_size=4, num_layers=2
    BATCH, SEQ, INPUT, HIDDEN, OUTPUT, LAYERS = 2, 8, 4, 32, 4, 2

    key = jax.random.PRNGKey(0)
    k_y, k_p = jax.random.split(key)
    y = jax.random.normal(k_y, (BATCH, SEQ, INPUT), jnp.float32)
    params = init_params(k_p, INPUT, HIDDEN, OUTPUT, LAYERS)

    out = rnn_forward(y, params, LAYERS)
    out = jax.block_until_ready(out)
    assert out.shape == (BATCH, SEQ, OUTPUT), out.shape

    ref = rnn_reference(y, params, LAYERS)
    assert jnp.allclose(out, ref, atol=1e-3, rtol=1e-3), (
        float(jnp.max(jnp.abs(out - ref))))

    print("KERNEL_OK")
</pallas_src>

<mosaic_0001>
module attributes {stable_mosaic.version = 11 : i64} {
  func.func @_rnn_kernel(%arg0: memref<2x8x4xf32, #tpu.memory_space<vmem>>, %arg1: memref<4x32xf32, #tpu.memory_space<vmem>>, %arg2: memref<1x32x32xf32, #tpu.memory_space<vmem>>, %arg3: memref<2x32x32xf32, #tpu.memory_space<vmem>>, %arg4: memref<2x1x32xf32, #tpu.memory_space<vmem>>, %arg5: memref<32x4xf32, #tpu.memory_space<vmem>>, %arg6: memref<1x4xf32, #tpu.memory_space<vmem>>, %arg7: memref<2x8x4xf32, #tpu.memory_space<vmem>>) attributes {dimension_semantics = [], scalar_prefetch = 0 : i64, scratch_operands = 0 : i64, tpu.core_type = #tpu.core_type<tc>} {
    %c1 = arith.constant 1 : index
    %c0 = arith.constant 0 : index
    %c0_0 = arith.constant 0 : index
    %0 = vector.load %arg0[%c1, %c0, %c0_0] : memref<2x8x4xf32, #tpu.memory_space<vmem>>, vector<1x8x4xf32>
    %1 = vector.shape_cast %0 : vector<1x8x4xf32> to vector<8x4xf32>
    %c0_1 = arith.constant 0 : index
    %c0_2 = arith.constant 0 : index
    %c0_3 = arith.constant 0 : index
    %2 = vector.load %arg0[%c0_1, %c0_2, %c0_3] : memref<2x8x4xf32, #tpu.memory_space<vmem>>, vector<1x8x4xf32>
    %3 = vector.shape_cast %2 : vector<1x8x4xf32> to vector<8x4xf32>
    %4 = tpu.concatenate %1, %3 in 0 : vector<8x4xf32>, vector<8x4xf32> -> vector<16x4xf32>
    %c0_4 = arith.constant 0 : index
    %c0_5 = arith.constant 0 : index
    %5 = vector.load %arg1[%c0_4, %c0_5] : memref<4x32xf32, #tpu.memory_space<vmem>>, vector<4x32xf32>
    %c0_6 = arith.constant 0 : index
    %c0_7 = arith.constant 0 : index
    %c0_8 = arith.constant 0 : index
    %6 = vector.load %arg3[%c0_6, %c0_7, %c0_8] : memref<2x32x32xf32, #tpu.memory_space<vmem>>, vector<1x32x32xf32>
    %7 = vector.shape_cast %6 : vector<1x32x32xf32> to vector<32x32xf32>
    %c0_9 = arith.constant 0 : index
    %c0_10 = arith.constant 0 : index
    %c0_11 = arith.constant 0 : index
    %8 = vector.load %arg4[%c0_9, %c0_10, %c0_11] : memref<2x1x32xf32, #tpu.memory_space<vmem>>, vector<1x1x32xf32>
    %9 = vector.shape_cast %8 : vector<1x1x32xf32> to vector<1x32xf32>
    %cst = arith.constant dense<0.000000e+00> : vector<16x32xf32>
    %10 = tpu.matmul %4, %5, %cst {dimension_numbers = #tpu.dot_dimension_numbers<[1], [0], [0], [1], [0, 0, 1, 1], [], []>} : vector<16x4xf32>, vector<4x32xf32>, vector<16x32xf32> -> vector<16x32xf32>
    %11 = vector.broadcast %9 : vector<1x32xf32> to vector<16x32xf32>
    %12 = arith.addf %10, %11 : vector<16x32xf32>
    %cst_12 = arith.constant 0.000000e+00 : f32
    %13 = vector.broadcast %cst_12 : f32 to vector<2x32xf32>
    %14 = vector.extract_strided_slice %12 {offsets = [0, 0], sizes = [1, 32], strides = [1, 1]} : vector<16x32xf32> to vector<1x32xf32>
    %15 = vector.extract_strided_slice %12 {offsets = [8, 0], sizes = [1, 32], strides = [1, 1]} : vector<16x32xf32> to vector<1x32xf32>
    %16 = tpu.concatenate %14, %15 in 0 : vector<1x32xf32>, vector<1x32xf32> -> vector<2x32xf32>
    %cst_13 = arith.constant dense<0.000000e+00> : vector<2x32xf32>
    %17 = tpu.matmul %13, %7, %cst_13 {dimension_numbers = #tpu.dot_dimension_numbers<[1], [0], [0], [1], [0, 0, 1, 1], [], []>} : vector<2x32xf32>, vector<32x32xf32>, vector<2x32xf32> -> vector<2x32xf32>
    %18 = arith.addf %16, %17 : vector<2x32xf32>
    %cst_14 = arith.constant 0.000000e+00 : f32
    %19 = vector.broadcast %cst_14 : f32 to vector<2x32xf32>
    %20 = arith.maximumf %18, %19 : vector<2x32xf32>
    %21 = vector.extract_strided_slice %12 {offsets = [1, 0], sizes = [1, 32], strides = [1, 1]} : vector<16x32xf32> to vector<1x32xf32>
    %22 = vector.extract_strided_slice %12 {offsets = [9, 0], sizes = [1, 32], strides = [1, 1]} : vector<16x32xf32> to vector<1x32xf32>
    %23 = tpu.concatenate %21, %22 in 0 : vector<1x32xf32>, vector<1x32xf32> -> vector<2x32xf32>
    %cst_15 = arith.constant dense<0.000000e+00> : vector<2x32xf32>
    %24 = tpu.matmul %20, %7, %cst_15 {dimension_numbers = #tpu.dot_dimension_numbers<[1], [0], [0], [1], [0, 0, 1, 1], [], []>} : vector<2x32xf32>, vector<32x32xf32>, vector<2x32xf32> -> vector<2x32xf32>
    %25 = arith.addf %23, %24 : vector<2x32xf32>
    %cst_16 = arith.constant 0.000000e+00 : f32
    %26 = vector.broadcast %cst_16 : f32 to vector<2x32xf32>
    %27 = arith.maximumf %25, %26 : vector<2x32xf32>
    %28 = vector.extract_strided_slice %12 {offsets = [2, 0], sizes = [1, 32], strides = [1, 1]} : vector<16x32xf32> to vector<1x32xf32>
    %29 = vector.extract_strided_slice %12 {offsets = [10, 0], sizes = [1, 32], strides = [1, 1]} : vector<16x32xf32> to vector<1x32xf32>
    %30 = tpu.concatenate %28, %29 in 0 : vector<1x32xf32>, vector<1x32xf32> -> vector<2x32xf32>
    %cst_17 = arith.constant dense<0.000000e+00> : vector<2x32xf32>
    %31 = tpu.matmul %27, %7, %cst_17 {dimension_numbers = #tpu.dot_dimension_numbers<[1], [0], [0], [1], [0, 0, 1, 1], [], []>} : vector<2x32xf32>, vector<32x32xf32>, vector<2x32xf32> -> vector<2x32xf32>
    %32 = arith.addf %30, %31 : vector<2x32xf32>
    %cst_18 = arith.constant 0.000000e+00 : f32
    %33 = vector.broadcast %cst_18 : f32 to vector<2x32xf32>
    %34 = arith.maximumf %32, %33 : vector<2x32xf32>
    %35 = vector.extract_strided_slice %12 {offsets = [3, 0], sizes = [1, 32], strides = [1, 1]} : vector<16x32xf32> to vector<1x32xf32>
    %36 = vector.extract_strided_slice %12 {offsets = [11, 0], sizes = [1, 32], strides = [1, 1]} : vector<16x32xf32> to vector<1x32xf32>
    %37 = tpu.concatenate %35, %36 in 0 : vector<1x32xf32>, vector<1x32xf32> -> vector<2x32xf32>
    %cst_19 = arith.constant dense<0.000000e+00> : vector<2x32xf32>
    %38 = tpu.matmul %34, %7, %cst_19 {dimension_numbers = #tpu.dot_dimension_numbers<[1], [0], [0], [1], [0, 0, 1, 1], [], []>} : vector<2x32xf32>, vector<32x32xf32>, vector<2x32xf32> -> vector<2x32xf32>
    %39 = arith.addf %37, %38 : vector<2x32xf32>
    %cst_20 = arith.constant 0.000000e+00 : f32
    %40 = vector.broadcast %cst_20 : f32 to vector<2x32xf32>
    %41 = arith.maximumf %39, %40 : vector<2x32xf32>
    %42 = vector.extract_strided_slice %12 {offsets = [4, 0], sizes = [1, 32], strides = [1, 1]} : vector<16x32xf32> to vector<1x32xf32>
    %43 = vector.extract_strided_slice %12 {offsets = [12, 0], sizes = [1, 32], strides = [1, 1]} : vector<16x32xf32> to vector<1x32xf32>
    %44 = tpu.concatenate %42, %43 in 0 : vector<1x32xf32>, vector<1x32xf32> -> vector<2x32xf32>
    %cst_21 = arith.constant dense<0.000000e+00> : vector<2x32xf32>
    %45 = tpu.matmul %41, %7, %cst_21 {dimension_numbers = #tpu.dot_dimension_numbers<[1], [0], [0], [1], [0, 0, 1, 1], [], []>} : vector<2x32xf32>, vector<32x32xf32>, vector<2x32xf32> -> vector<2x32xf32>
    %46 = arith.addf %44, %45 : vector<2x32xf32>
    %cst_22 = arith.constant 0.000000e+00 : f32
    %47 = vector.broadcast %cst_22 : f32 to vector<2x32xf32>
    %48 = arith.maximumf %46, %47 : vector<2x32xf32>
    %49 = vector.extract_strided_slice %12 {offsets = [5, 0], sizes = [1, 32], strides = [1, 1]} : vector<16x32xf32> to vector<1x32xf32>
    %50 = vector.extract_strided_slice %12 {offsets = [13, 0], sizes = [1, 32], strides = [1, 1]} : vector<16x32xf32> to vector<1x32xf32>
    %51 = tpu.concatenate %49, %50 in 0 : vector<1x32xf32>, vector<1x32xf32> -> vector<2x32xf32>
    %cst_23 = arith.constant dense<0.000000e+00> : vector<2x32xf32>
    %52 = tpu.matmul %48, %7, %cst_23 {dimension_numbers = #tpu.dot_dimension_numbers<[1], [0], [0], [1], [0, 0, 1, 1], [], []>} : vector<2x32xf32>, vector<32x32xf32>, vector<2x32xf32> -> vector<2x32xf32>
    %53 = arith.addf %51, %52 : vector<2x32xf32>
    %cst_24 = arith.constant 0.000000e+00 : f32
    %54 = vector.broadcast %cst_24 : f32 to vector<2x32xf32>
    %55 = arith.maximumf %53, %54 : vector<2x32xf32>
    %56 = vector.extract_strided_slice %12 {offsets = [6, 0], sizes = [1, 32], strides = [1, 1]} : vector<16x32xf32> to vector<1x32xf32>
    %57 = vector.extract_strided_slice %12 {offsets = [14, 0], sizes = [1, 32], strides = [1, 1]} : vector<16x32xf32> to vector<1x32xf32>
    %58 = tpu.concatenate %56, %57 in 0 : vector<1x32xf32>, vector<1x32xf32> -> vector<2x32xf32>
    %cst_25 = arith.constant dense<0.000000e+00> : vector<2x32xf32>
    %59 = tpu.matmul %55, %7, %cst_25 {dimension_numbers = #tpu.dot_dimension_numbers<[1], [0], [0], [1], [0, 0, 1, 1], [], []>} : vector<2x32xf32>, vector<32x32xf32>, vector<2x32xf32> -> vector<2x32xf32>
    %60 = arith.addf %58, %59 : vector<2x32xf32>
    %cst_26 = arith.constant 0.000000e+00 : f32
    %61 = vector.broadcast %cst_26 : f32 to vector<2x32xf32>
    %62 = arith.maximumf %60, %61 : vector<2x32xf32>
    %63 = vector.extract_strided_slice %12 {offsets = [7, 0], sizes = [1, 32], strides = [1, 1]} : vector<16x32xf32> to vector<1x32xf32>
    %64 = vector.extract_strided_slice %12 {offsets = [15, 0], sizes = [1, 32], strides = [1, 1]} : vector<16x32xf32> to vector<1x32xf32>
    %65 = tpu.concatenate %63, %64 in 0 : vector<1x32xf32>, vector<1x32xf32> -> vector<2x32xf32>
    %cst_27 = arith.constant dense<0.000000e+00> : vector<2x32xf32>
    %66 = tpu.matmul %62, %7, %cst_27 {dimension_numbers = #tpu.dot_dimension_numbers<[1], [0], [0], [1], [0, 0, 1, 1], [], []>} : vector<2x32xf32>, vector<32x32xf32>, vector<2x32xf32> -> vector<2x32xf32>
    %67 = arith.addf %65, %66 : vector<2x32xf32>
    %cst_28 = arith.constant 0.000000e+00 : f32
    %68 = vector.broadcast %cst_28 : f32 to vector<2x32xf32>
    %69 = arith.maximumf %67, %68 : vector<2x32xf32>
    %70 = tpu.concatenate %20, %27, %34, %41, %48, %55, %62, %69 in 0 : vector<2x32xf32>, vector<2x32xf32>, vector<2x32xf32>, vector<2x32xf32>, vector<2x32xf32>, vector<2x32xf32>, vector<2x32xf32>, vector<2x32xf32> -> vector<16x32xf32>
    %c0_29 = arith.constant 0 : index
    %c0_30 = arith.constant 0 : index
    %c0_31 = arith.constant 0 : index
    %71 = vector.load %arg2[%c0_29, %c0_30, %c0_31] : memref<1x32x32xf32, #tpu.memory_space<vmem>>, vector<1x32x32xf32>
    %72 = vector.shape_cast %71 : vector<1x32x32xf32> to vector<32x32xf32>
    %c1_32 = arith.constant 1 : index
    %c0_33 = arith.constant 0 : index
    %c0_34 = arith.constant 0 : index
    %73 = vector.load %arg3[%c1_32, %c0_33, %c0_34] : memref<2x32x32xf32, #tpu.memory_space<vmem>>, vector<1x32x32xf32>
    %74 = vector.shape_cast %73 : vector<1x32x32xf32> to vector<32x32xf32>
    %c1_35 = arith.constant 1 : index
    %c0_36 = arith.constant 0 : index
    %c0_37 = arith.constant 0 : index
    %75 = vector.load %arg4[%c1_35, %c0_36, %c0_37] : memref<2x1x32xf32, #tpu.memory_space<vmem>>, vector<1x1x32xf32>
    %76 = vector.shape_cast %75 : vector<1x1x32xf32> to vector<1x32xf32>
    %cst_38 = arith.constant dense<0.000000e+00> : vector<16x32xf32>
    %77 = tpu.matmul %70, %72, %cst_38 {dimension_numbers = #tpu.dot_dimension_numbers<[1], [0], [0], [1], [0, 0, 1, 1], [], []>} : vector<16x32xf32>, vector<32x32xf32>, vector<16x32xf32> -> vector<16x32xf32>
    %78 = vector.broadcast %76 : vector<1x32xf32> to vector<16x32xf32>
    %79 = arith.addf %77, %78 : vector<16x32xf32>
    %cst_39 = arith.constant 0.000000e+00 : f32
    %80 = vector.broadcast %cst_39 : f32 to vector<2x32xf32>
    %81 = vector.extract_strided_slice %79 {offsets = [0, 0], sizes = [2, 32], strides = [1, 1]} : vector<16x32xf32> to vector<2x32xf32>
    %cst_40 = arith.constant dense<0.000000e+00> : vector<2x32xf32>
    %82 = tpu.matmul %80, %74, %cst_40 {dimension_numbers = #tpu.dot_dimension_numbers<[1], [0], [0], [1], [0, 0, 1, 1], [], []>} : vector<2x32xf32>, vector<32x32xf32>, vector<2x32xf32> -> vector<2x32xf32>
    %83 = arith.addf %81, %82 : vector<2x32xf32>
    %cst_41 = arith.constant 0.000000e+00 : f32
    %84 = vector.broadcast %cst_41 : f32 to vector<2x32xf32>
    %85 = arith.maximumf %83, %84 : vector<2x32xf32>
    %86 = vector.extract_strided_slice %79 {offsets = [2, 0], sizes = [2, 32], strides = [1, 1]} : vector<16x32xf32> to vector<2x32xf32>
    %cst_42 = arith.constant dense<0.000000e+00> : vector<2x32xf32>
    %87 = tpu.matmul %85, %74, %cst_42 {dimension_numbers = #tpu.dot_dimension_numbers<[1], [0], [0], [1], [0, 0, 1, 1], [], []>} : vector<2x32xf32>, vector<32x32xf32>, vector<2x32xf32> -> vector<2x32xf32>
    %88 = arith.addf %86, %87 : vector<2x32xf32>
    %cst_43 = arith.constant 0.000000e+00 : f32
    %89 = vector.broadcast %cst_43 : f32 to vector<2x32xf32>
    %90 = arith.maximumf %88, %89 : vector<2x32xf32>
    %91 = vector.extract_strided_slice %79 {offsets = [4, 0], sizes = [2, 32], strides = [1, 1]} : vector<16x32xf32> to vector<2x32xf32>
    %cst_44 = arith.constant dense<0.000000e+00> : vector<2x32xf32>
    %92 = tpu.matmul %90, %74, %cst_44 {dimension_numbers = #tpu.dot_dimension_numbers<[1], [0], [0], [1], [0, 0, 1, 1], [], []>} : vector<2x32xf32>, vector<32x32xf32>, vector<2x32xf32> -> vector<2x32xf32>
    %93 = arith.addf %91, %92 : vector<2x32xf32>
    %cst_45 = arith.constant 0.000000e+00 : f32
    %94 = vector.broadcast %cst_45 : f32 to vector<2x32xf32>
    %95 = arith.maximumf %93, %94 : vector<2x32xf32>
    %96 = vector.extract_strided_slice %79 {offsets = [6, 0], sizes = [2, 32], strides = [1, 1]} : vector<16x32xf32> to vector<2x32xf32>
    %cst_46 = arith.constant dense<0.000000e+00> : vector<2x32xf32>
    %97 = tpu.matmul %95, %74, %cst_46 {dimension_numbers = #tpu.dot_dimension_numbers<[1], [0], [0], [1], [0, 0, 1, 1], [], []>} : vector<2x32xf32>, vector<32x32xf32>, vector<2x32xf32> -> vector<2x32xf32>
    %98 = arith.addf %96, %97 : vector<2x32xf32>
    %cst_47 = arith.constant 0.000000e+00 : f32
    %99 = vector.broadcast %cst_47 : f32 to vector<2x32xf32>
    %100 = arith.maximumf %98, %99 : vector<2x32xf32>
    %101 = vector.extract_strided_slice %79 {offsets = [8, 0], sizes = [2, 32], strides = [1, 1]} : vector<16x32xf32> to vector<2x32xf32>
    %cst_48 = arith.constant dense<0.000000e+00> : vector<2x32xf32>
    %102 = tpu.matmul %100, %74, %cst_48 {dimension_numbers = #tpu.dot_dimension_numbers<[1], [0], [0], [1], [0, 0, 1, 1], [], []>} : vector<2x32xf32>, vector<32x32xf32>, vector<2x32xf32> -> vector<2x32xf32>
    %103 = arith.addf %101, %102 : vector<2x32xf32>
    %cst_49 = arith.constant 0.000000e+00 : f32
    %104 = vector.broadcast %cst_49 : f32 to vector<2x32xf32>
    %105 = arith.maximumf %103, %104 : vector<2x32xf32>
    %106 = vector.extract_strided_slice %79 {offsets = [10, 0], sizes = [2, 32], strides = [1, 1]} : vector<16x32xf32> to vector<2x32xf32>
    %cst_50 = arith.constant dense<0.000000e+00> : vector<2x32xf32>
    %107 = tpu.matmul %105, %74, %cst_50 {dimension_numbers = #tpu.dot_dimension_numbers<[1], [0], [0], [1], [0, 0, 1, 1], [], []>} : vector<2x32xf32>, vector<32x32xf32>, vector<2x32xf32> -> vector<2x32xf32>
    %108 = arith.addf %106, %107 : vector<2x32xf32>
    %cst_51 = arith.constant 0.000000e+00 : f32
    %109 = vector.broadcast %cst_51 : f32 to vector<2x32xf32>
    %110 = arith.maximumf %108, %109 : vector<2x32xf32>
    %111 = vector.extract_strided_slice %79 {offsets = [12, 0], sizes = [2, 32], strides = [1, 1]} : vector<16x32xf32> to vector<2x32xf32>
    %cst_52 = arith.constant dense<0.000000e+00> : vector<2x32xf32>
    %112 = tpu.matmul %110, %74, %cst_52 {dimension_numbers = #tpu.dot_dimension_numbers<[1], [0], [0], [1], [0, 0, 1, 1], [], []>} : vector<2x32xf32>, vector<32x32xf32>, vector<2x32xf32> -> vector<2x32xf32>
    %113 = arith.addf %111, %112 : vector<2x32xf32>
    %cst_53 = arith.constant 0.000000e+00 : f32
    %114 = vector.broadcast %cst_53 : f32 to vector<2x32xf32>
    %115 = arith.maximumf %113, %114 : vector<2x32xf32>
    %116 = vector.extract_strided_slice %79 {offsets = [14, 0], sizes = [2, 32], strides = [1, 1]} : vector<16x32xf32> to vector<2x32xf32>
    %cst_54 = arith.constant dense<0.000000e+00> : vector<2x32xf32>
    %117 = tpu.matmul %115, %74, %cst_54 {dimension_numbers = #tpu.dot_dimension_numbers<[1], [0], [0], [1], [0, 0, 1, 1], [], []>} : vector<2x32xf32>, vector<32x32xf32>, vector<2x32xf32> -> vector<2x32xf32>
    %118 = arith.addf %116, %117 : vector<2x32xf32>
    %cst_55 = arith.constant 0.000000e+00 : f32
    %119 = vector.broadcast %cst_55 : f32 to vector<2x32xf32>
    %120 = arith.maximumf %118, %119 : vector<2x32xf32>
    %121 = tpu.concatenate %85, %90, %95, %100, %105, %110, %115, %120 in 0 : vector<2x32xf32>, vector<2x32xf32>, vector<2x32xf32>, vector<2x32xf32>, vector<2x32xf32>, vector<2x32xf32>, vector<2x32xf32>, vector<2x32xf32> -> vector<16x32xf32>
    %122 = vector.extract_strided_slice %121 {offsets = [0, 0], sizes = [1, 32], strides = [1, 1]} : vector<16x32xf32> to vector<1x32xf32>
    %123 = vector.extract_strided_slice %121 {offsets = [2, 0], sizes = [1, 32], strides = [1, 1]} : vector<16x32xf32> to vector<1x32xf32>
    %124 = vector.extract_strided_slice %121 {offsets = [4, 0], sizes = [1, 32], strides = [1, 1]} : vector<16x32xf32> to vector<1x32xf32>
    %125 = vector.extract_strided_slice %121 {offsets = [6, 0], sizes = [1, 32], strides = [1, 1]} : vector<16x32xf32> to vector<1x32xf32>
    %126 = vector.extract_strided_slice %121 {offsets = [8, 0], sizes = [1, 32], strides = [1, 1]} : vector<16x32xf32> to vector<1x32xf32>
    %127 = vector.extract_strided_slice %121 {offsets = [10, 0], sizes = [1, 32], strides = [1, 1]} : vector<16x32xf32> to vector<1x32xf32>
    %128 = vector.extract_strided_slice %121 {offsets = [12, 0], sizes = [1, 32], strides = [1, 1]} : vector<16x32xf32> to vector<1x32xf32>
    %129 = vector.extract_strided_slice %121 {offsets = [14, 0], sizes = [1, 32], strides = [1, 1]} : vector<16x32xf32> to vector<1x32xf32>
    %130 = tpu.concatenate %122, %123, %124, %125, %126, %127, %128, %129 in 0 : vector<1x32xf32>, vector<1x32xf32>, vector<1x32xf32>, vector<1x32xf32>, vector<1x32xf32>, vector<1x32xf32>, vector<1x32xf32>, vector<1x32xf32> -> vector<8x32xf32>
    %131 = vector.extract_strided_slice %121 {offsets = [1, 0], sizes = [1, 32], strides = [1, 1]} : vector<16x32xf32> to vector<1x32xf32>
    %132 = vector.extract_strided_slice %121 {offsets = [3, 0], sizes = [1, 32], strides = [1, 1]} : vector<16x32xf32> to vector<1x32xf32>
    %133 = vector.extract_strided_slice %121 {offsets = [5, 0], sizes = [1, 32], strides = [1, 1]} : vector<16x32xf32> to vector<1x32xf32>
    %134 = vector.extract_strided_slice %121 {offsets = [7, 0], sizes = [1, 32], strides = [1, 1]} : vector<16x32xf32> to vector<1x32xf32>
    %135 = vector.extract_strided_slice %121 {offsets = [9, 0], sizes = [1, 32], strides = [1, 1]} : vector<16x32xf32> to vector<1x32xf32>
    %136 = vector.extract_strided_slice %121 {offsets = [11, 0], sizes = [1, 32], strides = [1, 1]} : vector<16x32xf32> to vector<1x32xf32>
    %137 = vector.extract_strided_slice %121 {offsets = [13, 0], sizes = [1, 32], strides = [1, 1]} : vector<16x32xf32> to vector<1x32xf32>
    %138 = vector.extract_strided_slice %121 {offsets = [15, 0], sizes = [1, 32], strides = [1, 1]} : vector<16x32xf32> to vector<1x32xf32>
    %139 = tpu.concatenate %131, %132, %133, %134, %135, %136, %137, %138 in 0 : vector<1x32xf32>, vector<1x32xf32>, vector<1x32xf32>, vector<1x32xf32>, vector<1x32xf32>, vector<1x32xf32>, vector<1x32xf32>, vector<1x32xf32> -> vector<8x32xf32>
    %140 = tpu.concatenate %130, %139 in 0 : vector<8x32xf32>, vector<8x32xf32> -> vector<16x32xf32>
    %c0_56 = arith.constant 0 : index
    %c0_57 = arith.constant 0 : index
    %141 = vector.load %arg5[%c0_56, %c0_57] : memref<32x4xf32, #tpu.memory_space<vmem>>, vector<32x4xf32>
    %cst_58 = arith.constant dense<0.000000e+00> : vector<16x4xf32>
    %142 = tpu.matmul %140, %141, %cst_58 {dimension_numbers = #tpu.dot_dimension_numbers<[1], [0], [0], [1], [0, 0, 1, 1], [], []>} : vector<16x32xf32>, vector<32x4xf32>, vector<16x4xf32> -> vector<16x4xf32>
    %c0_59 = arith.constant 0 : index
    %c0_60 = arith.constant 0 : index
    %143 = vector.load %arg6[%c0_59, %c0_60] : memref<1x4xf32, #tpu.memory_space<vmem>>, vector<1x4xf32>
    %144 = vector.broadcast %143 : vector<1x4xf32> to vector<16x4xf32>
    %145 = arith.addf %142, %144 : vector<16x4xf32>
    %146 = vector.extract_strided_slice %145 {offsets = [0, 0], sizes = [8, 4], strides = [1, 1]} : vector<16x4xf32> to vector<8x4xf32>
    %c0_61 = arith.constant 0 : index
    %c0_62 = arith.constant 0 : index
    %c0_63 = arith.constant 0 : index
    %147 = vector.load %arg7[%c0_61, %c0_62, %c0_63] : memref<2x8x4xf32, #tpu.memory_space<vmem>>, vector<1x8x4xf32>
    %148 = vector.shape_cast %147 : vector<1x8x4xf32> to vector<8x4xf32>
    %149 = vector.shape_cast %146 : vector<8x4xf32> to vector<1x8x4xf32>
    tpu.vector_store %arg7[%c0_61, %c0_62, %c0_63], %149 {strides = array<i32>} : memref<2x8x4xf32, #tpu.memory_space<vmem>>, vector<1x8x4xf32>,
    %150 = vector.extract_strided_slice %145 {offsets = [8, 0], sizes = [8, 4], strides = [1, 1]} : vector<16x4xf32> to vector<8x4xf32>
    %c1_64 = arith.constant 1 : index
    %c0_65 = arith.constant 0 : index
    %c0_66 = arith.constant 0 : index
    %151 = vector.load %arg7[%c1_64, %c0_65, %c0_66] : memref<2x8x4xf32, #tpu.memory_space<vmem>>, vector<1x8x4xf32>
    %152 = vector.shape_cast %151 : vector<1x8x4xf32> to vector<8x4xf32>
    %153 = vector.shape_cast %150 : vector<8x4xf32> to vector<1x8x4xf32>
    tpu.vector_store %arg7[%c1_64, %c0_65, %c0_66], %153 {strides = array<i32>} : memref<2x8x4xf32, #tpu.memory_space<vmem>>, vector<1x8x4xf32>,
    return
  }
}

</mosaic_0001>

<bundles_post_ra>
// kernel: tpu_custom_call.1
= control target key start
LH: loop header
LB: loop body
LE: loop exit
PB: predicated region body
PF: predicated region fallthrough
CT: control target
= control target key end

     0   :  { %12 = vsyncpa [#allocation3], 0  ;;  %s756_s27 = smov [#allocation2]   ;;  %s757_s29 = smov 128   ;;  %s917_s0 = inlined_call_operand.vmem [shape: f32[2,8,4], index: 0, kind: input, shape index: {}]   ;;  %s918_s1 = inlined_call_operand.vmem [shape: f32[4,32], index: 1, kind: input, shape index: {}]   ;;  %s919_s2 = inlined_call_operand.vmem [shape: f32[1,32,32], index: 2, kind: input, shape index: {}]   ;;  %s920_s3 = inlined_call_operand.hbm [shape: f32[2,32,32], index: 3, kind: input, shape index: {}]   ;;  %s921_s4 = inlined_call_operand.vmem [shape: f32[2,1,32], index: 4, kind: input, shape index: {}]   ;;  %s922_s5 = inlined_call_operand.vmem [shape: f32[32,4], index: 5, kind: input, shape index: {}]   ;;  %s923_s6 = inlined_call_operand.vmem [shape: f32[1,4], index: 6, kind: input, shape index: {}]   ;;  %s924_s7 = inlined_call_operand.vmem [shape: f32[2,8,4], index: 7, kind: output, shape index: {}]  }
   0x1   :  { %s23_s26 = sshll.u32 %s920_s3, 4  ;;  %s25_s28 = sshll.u32 %s756_s27, 4  ;;  %s24_s26 = int_to_ptr.hbm [resolvable:$true] %s23_s26  ;;  %s26_s28 = int_to_ptr.vmem [resolvable:$true] %s25_s28 }
   0x2   :  { %s758_s30 = smov 8  }
   0x3   :  { %31 = dma.hbm_to_vmem [thread:$0]  %s24_s26, 1024, %s26_s28, [#allocation3], %s757_s29, %s757_s29, %s758_s30  }
   0x4   :  { %754 = dma.done.wait [#allocation3], 1024  }
   0x5   :  { %755 = vsyncadd [#allocation3], 4294966272  ;;  %vm61_vm0 = vcmask 1043456   ;;  %vm54_vm1 = vcmask 31744   ;;  %v45_v0 = vld [vmem:[%s918_s1] sm:$0xf] }
   0x6   :  { %v698_v1 = vld [vmem:[%s917_s0 + $0x8] sm:$0xff]  ;;  %v44_v2 = vld [vmem:[%s917_s0] sm:$0xff]  ;;  %699 = vmatpush.msk.msra.mxu0 %vm61_vm0, %v45_v0  ;;  %722 = vmatpush.msk.msra.mxu1 %vm61_vm0, %v45_v0  ;;  %v49_v3 = vld [vmem:[#allocation2 + $0x18] sm:$0xff]  ;;  %v759_v7 = vmov 0.0   ;;  %vm91_vm2 = vcmask 1040384   ;;  %vm93_vm3 = vcmask 261120  }
   0x7   :  { %700 = vmatmul.msk.f32.vlgmr.msra.gmra.mxu0 %vm54_vm1, %v698_v1  ;;  %701 = vmatmul.msk.f32.vlgmr.msra.gmra.mxu1 %vm54_vm1, %v44_v2  ;;  %v48_v4 = vld [vmem:[#allocation2 + $0x10] sm:$0xff]  ;;  %v47_v5 = vld [vmem:[#allocation2 + $0x8] sm:$0xff]  ;;  %v46_v6 = vld [vmem:[#allocation2] sm:$0xff]  ;;  %vm341_vm4 = vcmask 1041408   ;;  %vm344_vm5 = vcmask 1045504   ;;  %vm636_vm6 = vcmask 1042432  }
   0x8   :  { %109 = vmatpush.msrb.mxu1 %v49_v3  ;;  %138 = vmatpush.msra.mxu2 %v49_v3  ;;  %v727_v8 = vld [vmem:[%s921_s4] ss:$0 sm:$0xff]  ;;  %v352_v48 = vld [vmem:[%s919_s2 + $0x18] sm:$0xff]  ;;  %v351_v49 = vld [vmem:[%s919_s2 + $0x10] sm:$0xff]  ;;  %vm639_vm7 = vcmask 1044480   ;;  %vm642_vm8 = vcmask 1046528  }
   0x9   :  { %168 = vmatpush.msra.mxu3 %v49_v3  ;;  %288 = vmatpush.msrb.mxu0 %v49_v3  ;;  %v350_v50 = vld [vmem:[%s919_s2 + $0x8] sm:$0xff]  ;;  %v349_v51 = vld [vmem:[%s919_s2] sm:$0xff]  ;;  %v357_v57 = vld [vmem:[#allocation2 + $0x38] sm:$0xff] }
   0xa   :  { %110 = vmatpush.msrb.mxu1 %v48_v4  ;;  %139 = vmatpush.msra.mxu2 %v48_v4  ;;  %v356_v58 = vld [vmem:[#allocation2 + $0x30] sm:$0xff]  ;;  %v355_v59 = vld [vmem:[#allocation2 + $0x28] sm:$0xff]  ;;  %v354_v60 = vld [vmem:[#allocation2 + $0x20] sm:$0xff] }
   0xb   :  { %169 = vmatpush.msra.mxu3 %v48_v4  ;;  %289 = vmatpush.msrb.mxu0 %v48_v4  ;;  %v728_v2 = vld [vmem:[%s921_s4 + $0x1] ss:$0 sm:$0xff] }
   0xc   :  { %111 = vmatpush.msrb.mxu1 %v47_v5  ;;  %140 = vmatpush.msra.mxu2 %v47_v5 }
   0xd   :  { %170 = vmatpush.msra.mxu3 %v47_v5  ;;  %290 = vmatpush.msrb.mxu0 %v47_v5 }
   0xe   :  { %112 = vmatpush.msrb.mxu1 %v46_v6  ;;  %141 = vmatpush.msra.mxu2 %v46_v6 }
   0xf   :  { %113 = vmatmul.f32.vlgmr.msrb.gmra.mxu1 %v759_v7  ;;  %171 = vmatpush.msra.mxu3 %v46_v6 }
  0x10   :  { %198 = vmatpush.msra.mxu1 %v49_v3  ;;  %228 = vmatpush.msrb.mxu2 %v49_v3 }
  0x11   :  { %258 = vmatpush.msrb.mxu3 %v49_v3  ;;  %291 = vmatpush.msrb.mxu0 %v46_v6 }
  0x12   :  { %199 = vmatpush.msra.mxu1 %v48_v4  ;;  %229 = vmatpush.msrb.mxu2 %v48_v4 }
  0x13   :  { %259 = vmatpush.msrb.mxu3 %v48_v4  ;;  %429 = vmatpush.msra.mxu0 %v357_v57 }
  0x14   :  { %200 = vmatpush.msra.mxu1 %v47_v5  ;;  %230 = vmatpush.msrb.mxu2 %v47_v5 }
  0x15   :  { %260 = vmatpush.msrb.mxu3 %v47_v5  ;;  %430 = vmatpush.msra.mxu0 %v356_v58 }
  0x16   :  { %201 = vmatpush.msra.mxu1 %v46_v6  ;;  %231 = vmatpush.msrb.mxu2 %v46_v6 }
  0x17   :  { %261 = vmatpush.msrb.mxu3 %v46_v6  ;;  %431 = vmatpush.msra.mxu0 %v355_v59 }
  0x18   :  { %318 = vmatpush.msrb.mxu1 %v49_v3 }
  0x19   :  { %432 = vmatpush.msra.mxu0 %v354_v60 }
  0x1a   :  { %319 = vmatpush.msrb.mxu1 %v48_v4 }
  0x1c   :  { %320 = vmatpush.msrb.mxu1 %v47_v5 }
  0x1e   :  { %321 = vmatpush.msrb.mxu1 %v46_v6 }
  0x84   :  { %v82_v9 = vpop.f32.mrf.mxu0  ;;  %v85_v10 = vpop.f32.mrf.mxu1 }
  0x85   :  { %v83_v11 = vadd.f32 %v727_v8, %v82_v9  ;;  %v86_v12 = vadd.f32 %v727_v8, %v85_v10 }
  0x87   :  { %v89_v13 = vrot.slane %v86_v12, 7  ;;  %v120_v14 = vrot.slane %v83_v11, 1  ;;  %v148_v15 = vrot.slane %v83_v11, 2  ;;  %v150_v16 = vrot.slane %v86_v12, 1 }
  0x88   :  { %v178_v17 = vrot.slane %v83_v11, 3  ;;  %v180_v18 = vrot.slane %v86_v12, 2  ;;  %v208_v19 = vrot.slane %v83_v11, 4  ;;  %v210_v20 = vrot.slane %v86_v12, 3 }
  0x89   :  { %v122_v21 = vsel %vm91_vm2, %v120_v14, %v86_v12  ;;  %v152_v22 = vsel %vm91_vm2, %v148_v15, %v150_v16  ;;  %v238_v23 = vrot.slane %v83_v11, 5  ;;  %v240_v26 = vrot.slane %v86_v12, 4 }
  0x8a   :  { %v182_v24 = vsel %vm91_vm2, %v178_v17, %v180_v18  ;;  %v824_v25 = vsel %vm91_vm2, %v208_v19, %v210_v20  ;;  %v268_v27 = vrot.slane %v83_v11, 6  ;;  %v270_v28 = vrot.slane %v86_v12, 5 }
  0x8b   :  { %v298_v29 = vrot.slane %v83_v11, 7  ;;  %v300_v30 = vrot.slane %v86_v12, 6  ;;  %v92_v31 = vsel %vm91_vm2, %v83_v11, %v89_v13  ;;  %v828_v33 = vsel %vm91_vm2, %v238_v23, %v240_v26 }
  0x8c   :  { %v114_v32 = vpop.f32.mrf.mxu1  ;;  %v831_v35 = vsel %vm91_vm2, %v268_v27, %v270_v28 }
  0x8d   :  { %v117_v34 = vadd.f32 %v114_v32, %v92_v31  ;;  %v834_v36 = vsel %vm91_vm2, %v298_v29, %v300_v30 }
  0x8f   :  { %v118_v37 = vmax.f32 %v117_v34, 0.0 }
  0x91   :  { %702 = vmatmul.msk.f32.vlgmr.msra.gmra.mxu2 %vm93_vm3, %v118_v37 }
  0x92   :  { %381 = vmatpush.msra.mxu2 %v352_v48 }
  0x94   :  { %382 = vmatpush.msra.mxu2 %v351_v49 }
  0x96   :  { %383 = vmatpush.msra.mxu2 %v350_v50 }
  0x98   :  { %384 = vmatpush.msra.mxu2 %v349_v51 }
 0x114   :  { %v143_v38 = vpop.f32.mrf.mxu2 }
 0x115   :  { %v146_v39 = vadd.f32 %v143_v38, %v122_v21 }
 0x117   :  { %v147_v40 = vmax.f32 %v146_v39, 0.0 }
 0x119   :  { %703 = vmatmul.msk.f32.vlgmr.msra.gmra.mxu3 %vm93_vm3, %v147_v40  ;;  %v328_v43 = vrot.slane %v147_v40, 6 }
 0x11a   :  { %404 = vmatpush.msra.mxu3 %v357_v57 }
 0x11b   :  { %v342_v46 = vsel %vm341_vm4, %v118_v37, %v328_v43 }
 0x11c   :  { %405 = vmatpush.msra.mxu3 %v356_v58 }
 0x11e   :  { %406 = vmatpush.msra.mxu3 %v355_v59 }
 0x120   :  { %407 = vmatpush.msra.mxu3 %v354_v60 }
 0x19c   :  { %v173_v41 = vpop.f32.mrf.mxu3 }
 0x19d   :  { %v176_v42 = vadd.f32 %v173_v41, %v152_v22 }
 0x19f   :  { %v177_v44 = vmax.f32 %v176_v42, 0.0 }
 0x1a1   :  { %v330_v45 = vrot.slane %v177_v44, 4  ;;  %704 = vmatmul.msk.f32.vlgmr.msra.gmra.mxu1 %vm93_vm3, %v177_v44 }
 0x1a2   :  { %458 = vmatpush.msra.mxu1 %v357_v57 }
 0x1a3   :  { %v343_v47 = vsel %vm61_vm0, %v342_v46, %v330_v45 }
 0x1a4   :  { %459 = vmatpush.msra.mxu1 %v356_v58 }
 0x1a6   :  { %460 = vmatpush.msra.mxu1 %v355_v59 }
 0x1a8   :  { %461 = vmatpush.msra.mxu1 %v354_v60 }
 0x21e   :  { %v203_v52 = vpop.f32.mrf.mxu1 }
 0x21f   :  { %v206_v53 = vadd.f32 %v203_v52, %v182_v24 }
 0x221   :  { %v207_v54 = vmax.f32 %v206_v53, 0.0 }
 0x223   :  { %v332_v55 = vrot.slane %v207_v54, 2  ;;  %705 = vmatmul.msk.f32.vlgmr.msrb.gmra.mxu2 %vm93_vm3, %v207_v54 }
 0x224   :  { %570 = vmatpush.msrb.mxu2 %v357_v57 }
 0x225   :  { %v345_v56 = vsel %vm344_vm5, %v343_v47, %v332_v55 }
 0x226   :  { %571 = vmatpush.msrb.mxu2 %v356_v58 }
 0x228   :  { %572 = vmatpush.msrb.mxu2 %v355_v59 }
 0x22a   :  { %573 = vmatpush.msrb.mxu2 %v354_v60 }
 0x22b   :  { %710 = vmatmul.msk.f32.vlgmr.msra.gmra.mxu2 %vm93_vm3, %v345_v56  ;;  %v656_v56 = vld [vmem:[%s922_s5 + $0x18] sm:$0xff] }
 0x2a6   :  { %v233_v61 = vpop.f32.mrf.mxu2 }
 0x2a7   :  { %v236_v62 = vadd.f32 %v233_v61, %v824_v25 }
 0x2a9   :  { %v237_v63 = vmax.f32 %v236_v62, 0.0 }
 0x2ab   :  { %706 = vmatmul.msk.f32.vlgmr.msrb.gmra.mxu3 %vm93_vm3, %v237_v63 }
 0x2ac   :  { %487 = vmatpush.msrb.mxu3 %v357_v57 }
 0x2ae   :  { %488 = vmatpush.msrb.mxu3 %v356_v58  ;;  %v386_v4 = vpop.f32.mrf.mxu2 }
 0x2af   :  { %v387_v5 = vadd.f32 %v728_v2, %v386_v4 }
 0x2b0   :  { %489 = vmatpush.msrb.mxu3 %v355_v59 }
 0x2b2   :  { %490 = vmatpush.msrb.mxu3 %v354_v60 }
 0x2b3   :  { %408 = vmatmul.f32.vlgmr.msra.gmra.mxu3 %v759_v7 }
 0x2b4   :  { %599 = vmatpush.msra.mxu3 %v357_v57 }
 0x2b6   :  { %600 = vmatpush.msra.mxu3 %v356_v58 }
 0x2b8   :  { %601 = vmatpush.msra.mxu3 %v355_v59 }
 0x2ba   :  { %602 = vmatpush.msra.mxu3 %v354_v60 }
 0x32e   :  { %v263_v0 = vpop.f32.mrf.mxu3 }
 0x32f   :  { %v266_v1 = vadd.f32 %v263_v0, %v828_v33 }
 0x331   :  { %v267_v3 = vmax.f32 %v266_v1, 0.0 }
 0x333   :  { %707 = vmatmul.msk.f32.vlgmr.msrb.gmra.mxu0 %vm93_vm3, %v267_v3  ;;  %v334_v11 = vrot.slane %v267_v3, 6 }
 0x334   :  { %516 = vmatpush.msrb.mxu0 %v357_v57 }
 0x335   :  { %v346_v14 = vsel %vm341_vm4, %v237_v63, %v334_v11 }
 0x336   :  { %v409_v6 = vpop.f32.mrf.mxu3  ;;  %517 = vmatpush.msrb.mxu0 %v356_v58 }
 0x337   :  { %v412_v7 = vadd.f32 %v409_v6, %v387_v5 }
 0x338   :  { %518 = vmatpush.msrb.mxu0 %v355_v59 }
 0x339   :  { %v413_v8 = vmax.f32 %v412_v7, 0.0 }
 0x33a   :  { %519 = vmatpush.msrb.mxu0 %v354_v60 }
 0x33b   :  { %712 = vmatmul.msk.f32.vlgmr.msra.gmra.mxu0 %vm93_vm3, %v413_v8 }
 0x33c   :  { %679 = vmatpush.msra.mxu0 %v656_v56 }
 0x3b0   :  { %v293_v9 = vpop.f32.mrf.mxu0 }
 0x3b1   :  { %v296_v10 = vadd.f32 %v293_v9, %v831_v35 }
 0x3b3   :  { %v297_v12 = vmax.f32 %v296_v10, 0.0 }
 0x3b5   :  { %v336_v13 = vrot.slane %v297_v12, 4  ;;  %708 = vmatmul.msk.f32.vlgmr.msrb.gmra.mxu1 %vm93_vm3, %v297_v12 }
 0x3b6   :  { %541 = vmatpush.msrb.mxu1 %v357_v57  ;;  %v655_v57 = vld [vmem:[%s922_s5 + $0x10] sm:$0xff] }
 0x3b7   :  { %v347_v15 = vsel %vm61_vm0, %v346_v14, %v336_v13  ;;  %680 = vmatpush.msra.mxu0 %v655_v57 }
 0x3b8   :  { %v434_v16 = vpop.f32.mrf.mxu0  ;;  %542 = vmatpush.msrb.mxu1 %v356_v58  ;;  %v654_v58 = vld [vmem:[%s922_s5 + $0x8] sm:$0xff] }
 0x3b9   :  { %v438_v17 = vrot.slane %v434_v16, 6  ;;  %681 = vmatpush.msra.mxu0 %v654_v58 }
 0x3ba   :  { %543 = vmatpush.msrb.mxu1 %v355_v59  ;;  %v653_v59 = vld [vmem:[%s922_s5] sm:$0xff] }
 0x3bb   :  { %v440_v18 = vadd.f32 %v438_v17, %v387_v5  ;;  %682 = vmatpush.msra.mxu0 %v653_v59 }
 0x3bc   :  { %544 = vmatpush.msrb.mxu1 %v354_v60 }
 0x3bd   :  { %v441_v19 = vmax.f32 %v440_v18, 0.0 }
 0x3bf   :  { %v443_v20 = vrot.slane %v441_v19, 2  ;;  %v612_v30 = vsel %vm341_vm4, %v413_v8, %v441_v19 }
 0x3c1   :  { %713 = vmatmul.msk.f32.vlgmr.msra.gmra.mxu1 %vm93_vm3, %v443_v20 }
 0x432   :  { %v323_v21 = vpop.f32.mrf.mxu1 }
 0x433   :  { %v326_v22 = vadd.f32 %v323_v21, %v834_v36 }
 0x435   :  { %v327_v23 = vmax.f32 %v326_v22, 0.0 }
 0x437   :  { %v339_v24 = vrot.slane %v327_v23, 2  ;;  %v729_v23 = vld [vmem:[%s923_s6] ss:$0 sm:$0xff] }
 0x439   :  { %v348_v25 = vsel %vm344_vm5, %v347_v15, %v339_v24 }
 0x43a   :  { %711 = vmatmul.msk.f32.gmra.mxu2 %vm93_vm3, %v348_v25 }
 0x43e   :  { %v463_v26 = vpop.f32.mrf.mxu1 }
 0x43f   :  { %v467_v27 = vrot.slane %v463_v26, 4 }
 0x441   :  { %v469_v28 = vadd.f32 %v467_v27, %v387_v5 }
 0x443   :  { %v470_v29 = vmax.f32 %v469_v28, 0.0 }
 0x445   :  { %v472_v31 = vrot.slane %v470_v29, 4  ;;  %v613_v32 = vsel %vm61_vm0, %v612_v30, %v470_v29 }
 0x447   :  { %714 = vmatmul.msk.f32.vlgmr.msrb.gmra.mxu3 %vm93_vm3, %v472_v31 }
 0x4bd   :  { %v389_v39 = vpop.f32.mrf.mxu2 }
 0x4be   :  { %v390_v40 = vadd.f32 %v728_v2, %v389_v39 }
 0x4ca   :  { %v492_v33 = vpop.f32.mrf.mxu3 }
 0x4cb   :  { %v496_v34 = vrot.slane %v492_v33, 2 }
 0x4cd   :  { %v498_v35 = vadd.f32 %v496_v34, %v387_v5 }
 0x4cf   :  { %v499_v36 = vmax.f32 %v498_v35, 0.0 }
 0x4d1   :  { %v501_v37 = vrot.slane %v499_v36, 6  ;;  %v614_v38 = vsel %vm344_vm5, %v613_v32, %v499_v36 }
 0x4d2   :  { %v619_v60 = vrot.slane %v614_v38, 1  ;;  %v621_v61 = vrot.slane %v614_v38, 2  ;;  %v623_v0 = vrot.slane %v614_v38, 3  ;;  %v644_v7 = vrot.slane %v614_v38, 4 }
 0x4d3   :  { %715 = vmatmul.msk.f32.vlgmr.msrb.gmra.mxu0 %vm93_vm3, %v501_v37 }
 0x4d4   :  { %v634_v1 = vsel %vm91_vm2, %v614_v38, %v619_v60  ;;  %v646_v3 = vsel %vm91_vm2, %v619_v60, %v621_v61 }
 0x4d5   :  { %v635_v5 = vsel %vm341_vm4, %v634_v1, %v621_v61  ;;  %v647_v6 = vsel %vm341_vm4, %v646_v3, %v623_v0 }
 0x4d6   :  { %v637_v12 = vsel %vm636_vm6, %v635_v5, %v623_v0  ;;  %v648_v13 = vsel %vm636_vm6, %v647_v6, %v644_v7 }
 0x550   :  { %v521_v41 = vpop.f32.mrf.mxu0 }
 0x551   :  { %v524_v42 = vadd.f32 %v521_v41, %v390_v40 }
 0x553   :  { %v525_v43 = vmax.f32 %v524_v42, 0.0 }
 0x555   :  { %716 = vmatmul.msk.f32.vlgmr.msrb.gmra.mxu1 %vm93_vm3, %v525_v43 }
 0x5d2   :  { %v546_v44 = vpop.f32.mrf.mxu1 }
 0x5d3   :  { %v550_v45 = vrot.slane %v546_v44, 6 }
 0x5d5   :  { %v552_v46 = vadd.f32 %v550_v45, %v390_v40 }
 0x5d7   :  { %v553_v47 = vmax.f32 %v552_v46, 0.0 }
 0x5d9   :  { %v555_v48 = vrot.slane %v553_v47, 2  ;;  %v615_v53 = vsel %vm341_vm4, %v525_v43, %v553_v47 }
 0x5db   :  { %717 = vmatmul.msk.f32.vlgmr.msrb.gmra.mxu2 %vm93_vm3, %v555_v48 }
 0x65e   :  { %v575_v49 = vpop.f32.mrf.mxu2 }
 0x65f   :  { %v579_v50 = vrot.slane %v575_v49, 4 }
 0x661   :  { %v581_v51 = vadd.f32 %v579_v50, %v390_v40 }
 0x663   :  { %v582_v52 = vmax.f32 %v581_v51, 0.0 }
 0x665   :  { %v584_v54 = vrot.slane %v582_v52, 4  ;;  %v616_v55 = vsel %vm61_vm0, %v615_v53, %v582_v52 }
 0x667   :  { %718 = vmatmul.msk.f32.vlgmr.msra.gmra.mxu3 %vm93_vm3, %v584_v54 }
 0x6ea   :  { %v604_v62 = vpop.f32.mrf.mxu3 }
 0x6eb   :  { %v608_v63 = vrot.slane %v604_v62, 2 }
 0x6ed   :  { %v610_v2 = vadd.f32 %v608_v63, %v390_v40 }
 0x6ef   :  { %v611_v4 = vmax.f32 %v610_v2, 0.0 }
 0x6f1   :  { %v617_v8 = vsel %vm344_vm5, %v616_v55, %v611_v4 }
 0x6f2   :  { %v626_v9 = vrot.slane %v617_v8, 4  ;;  %v628_v10 = vrot.slane %v617_v8, 5  ;;  %v630_v11 = vrot.slane %v617_v8, 6  ;;  %v632_v14 = vrot.slane %v617_v8, 7 }
 0x6f4   :  { %v638_v15 = vsel %vm61_vm0, %v637_v12, %v626_v9  ;;  %v649_v16 = vsel %vm61_vm0, %v648_v13, %v628_v10 }
 0x6f5   :  { %v640_v17 = vsel %vm639_vm7, %v638_v15, %v628_v10  ;;  %v650_v18 = vsel %vm639_vm7, %v649_v16, %v630_v11 }
 0x6f6   :  { %v641_v19 = vsel %vm344_vm5, %v640_v17, %v630_v11  ;;  %v651_v20 = vsel %vm344_vm5, %v650_v18, %v632_v14 }
 0x6f7   :  { %v643_v21 = vsel %vm642_vm8, %v641_v19, %v632_v14  ;;  %v652_v22 = vsel %vm642_vm8, %v651_v20, %v617_v8 }
 0x6f8   :  { %719 = vmatmul.msk.f32.vlgmr.msra.gmra.mxu0 %vm93_vm3, %v643_v21 }
 0x700   :  { %720 = vmatmul.msk.f32.gmra.mxu0 %vm93_vm3, %v652_v22 }
 0x775   :  { %v684_v24 = vpop.f32.mrf.mxu0 }
 0x776   :  { %v685_v25 = vadd.f32 %v729_v23, %v684_v24 }
 0x778   :  { %690 = vst.msk [vmem:[%s924_s7] sm:$0xff] %vm54_vm1, %v685_v25 }
 0x77d   :  { %v687_v26 = vpop.f32.mrf.mxu0 }
 0x77e   :  { %v688_v27 = vadd.f32 %v729_v23, %v687_v26 }
 0x780   :  { %721 = vst.msk [vmem:[%s924_s7 + $0x8] sm:$0xff] %vm54_vm1, %v688_v27 }
 0x781   :  { %697 = vsyncpa [#allocation3], 1 }

</bundles_post_ra>
